<compile_context>
chip_gen: v7x
topology: tpu7x:2x2x1
jax: 0.10.0
libtpu: 0.0.40
codegen_flags: <defaults>
</compile_context>

<pallas_src>
import math

import jax
import jax.numpy as jnp
from jax.experimental import pallas as pl
from jax.experimental.pallas import tpu as pltpu

_LANES = 128
_TARGET_TILE_BYTES = 4 * 1024 * 1024     # ~4 MiB per buffer
_VMEM_LIMIT_BYTES = 32 * 1024 * 1024     # fits all generations


def _sublane_multiple(dtype) -> int:
    # 8 sublanes of 32-bit; sub-32-bit dtypes pack along sublanes.
    itemsize = jnp.dtype(dtype).itemsize
    return max(8, 8 * (4 // max(1, itemsize)))


def _make_tft_kernel(prediction_length):
    """out = (x * prediction_length) * 0 — matches reference op order."""

    def kernel(x_ref, o_ref):
        x = x_ref[...]
        p = jnp.asarray(prediction_length, x.dtype)
        zero = jnp.asarray(0, x.dtype)
        o_ref[...] = (x * p) * zero

    return kernel


class TemporalFusionTransformer:
    """Pallas TPU implementation of the reference PyTorch module."""

    def __init__(self, sequence_length: int, prediction_length: int, d_model: int):
        self.sequence_length = sequence_length
        self.prediction_length = prediction_length
        self.d_model = d_model
        # No learnable parameters in the reference module.

    def __call__(self, x: jax.Array) -> jax.Array:
        orig_shape = x.shape
        n = math.prod(orig_shape) if orig_shape else 1
        if n == 0:
            return x  # empty: x * P * 0 == x (same empty array)

        # --- choose a 2D view with zero extra HBM passes --------------------
        if n % _LANES == 0:
            # free contiguous reshape -> fully lane-dense (unmasked stores)
            x2d = x.reshape(n // _LANES, _LANES)
        else:
            # natural layout: last dim on lanes (stores may be lane-masked,
            # but no pad / slice passes over HBM)
            x2d = x.reshape(-1, orig_shape[-1])
        rows, lanes = x2d.shape

        itemsize = jnp.dtype(x.dtype).itemsize
        sub = _sublane_multiple(x.dtype)

        # dtype-aware tile size (~4 MiB per buffer), multiple of sublane packing
        rows_by_bytes = _TARGET_TILE_BYTES // (lanes * itemsize)
        rows_by_bytes = max(sub, (rows_by_bytes // sub) * sub)

        if rows > rows_by_bytes:
            block_rows = rows_by_bytes
        else:
            # force >= 2 grid steps when possible so v7x megacore can shard
            half = -(-rows // 2)
            half = -(-half // sub) * sub
            block_rows = half if half < rows else rows
        grid = (pl.cdiv(rows, block_rows),)

        out2d = pl.pallas_call(
            _make_tft_kernel(self.prediction_length),
            out_shape=jax.ShapeDtypeStruct((rows, lanes), x.dtype),
            grid=grid,
            in_specs=[pl.BlockSpec((block_rows, lanes), lambda i: (i, 0))],
            out_specs=pl.BlockSpec((block_rows, lanes), lambda i: (i, 0)),
            compiler_params=pltpu.CompilerParams(
                dimension_semantics=("parallel",),
                vmem_limit_bytes=_VMEM_LIMIT_BYTES,
            ),
        )(x2d)

        return out2d.reshape(orig_shape)


if __name__ == "__main__":
    sequence_length = 8
    prediction_length = 4
    d_model = 32
    batch = 2

    key = jax.random.PRNGKey(0)
    x = jax.random.normal(
        key, (batch, sequence_length, d_model), dtype=jnp.float32
    )

    model = TemporalFusionTransformer(sequence_length, prediction_length, d_model)
    out = model(x)
    out = jax.block_until_ready(out)

    # Reference semantics: x * prediction_length * 0, same shape/dtype.
    ref = x * prediction_length * 0
    assert out.shape == x.shape and out.dtype == x.dtype
    assert bool(jnp.allclose(out, ref))

    print("KERNEL_OK")
</pallas_src>

<mosaic_0001>
module attributes {stable_mosaic.version = 11 : i64} {
  func.func @kernel(%arg0: i32, %arg1: memref<4x128xf32, #tpu.memory_space<vmem>>, %arg2: memref<4x128xf32, #tpu.memory_space<vmem>>) attributes {dimension_semantics = [#tpu.dimension_semantics<parallel>], iteration_bounds = array<i64: 1>, scalar_prefetch = 0 : i64, scratch_operands = 0 : i64, tpu.core_type = #tpu.core_type<tc>, window_params = [{transform_indices = @transform_0, window_bounds = array<i64: 4, 128>}, {transform_indices = @transform_1, window_bounds = array<i64: 4, 128>}]} {
    %c0 = arith.constant 0 : index
    %c0_0 = arith.constant 0 : index
    %0 = vector.load %arg1[%c0, %c0_0] : memref<4x128xf32, #tpu.memory_space<vmem>>, vector<4x128xf32>
    %cst = arith.constant 4.000000e+00 : f32
    %1 = vector.broadcast %cst : f32 to vector<4x128xf32>
    %2 = arith.mulf %0, %1 : vector<4x128xf32>
    %cst_1 = arith.constant 0.000000e+00 : f32
    %3 = vector.broadcast %cst_1 : f32 to vector<4x128xf32>
    %4 = arith.mulf %2, %3 : vector<4x128xf32>
    %c0_2 = arith.constant 0 : index
    %c0_3 = arith.constant 0 : index
    %5 = vector.load %arg2[%c0_2, %c0_3] : memref<4x128xf32, #tpu.memory_space<vmem>>, vector<4x128xf32>
    tpu.vector_store %arg2[%c0_2, %c0_3], %4 {strides = array<i32>} : memref<4x128xf32, #tpu.memory_space<vmem>>, vector<4x128xf32>,
    return
  }
  func.func @transform_0(%arg0: i32) -> (i32, i32) {
    %c0_i32 = arith.constant 0 : i32
    %c0_i32_0 = arith.constant 0 : i32
    return %arg0, %c0_i32 : i32, i32
  }
  func.func @transform_1(%arg0: i32) -> (i32, i32) {
    %c0_i32 = arith.constant 0 : i32
    %c0_i32_0 = arith.constant 0 : i32
    return %arg0, %c0_i32 : i32, i32
  }
}

</mosaic_0001>

<bundles_post_ra>
// kernel: tpu_custom_call.1
= control target key start
LH: loop header
LB: loop body
LE: loop exit
PB: predicated region body
PF: predicated region fallthrough
CT: control target
= control target key end

     0   :  { %6 = vsyncpa [#allocation3], 0  ;;  %s126_s0 = inlined_call_operand.hbm [shape: f32[4,128], index: 0, kind: input, shape index: {}]   ;;  %s127_s1 = inlined_call_operand.hbm [shape: f32[4,128], index: 1, kind: output, shape index: {}]  }
   0x1   :  { %7 = vsyncpa [#allocation4], 0  ;;  %s90_s6 = smov [#allocation2]   ;;  %s42_s10 = scalar_lea.hbm %s126_s0, 64 }
   0x2   :  { %s14_s7 = sshll.u32 %s90_s6, 4  ;;  %p43_p0 = scmp.ne.s32.totalorder %s126_s0, %s42_s10  ;;  %s15_s7 = int_to_ptr.vmem [resolvable:$true] %s14_s7 }
   0x3   :  { %p46_p1 = scmp.lt.u32.totalorder %s42_s10, %s126_s0 }
   0x5   :  { %p48_p2 = pnand %p46_p1, %p43_p0 }
   0x7   :  { %51 = shalt.err (!%p48_p2)
}
   0x8   :  { %s52_s15 = scalar_lea.vmem %s15_s7, 64  ;;  %p57_p4 = scmp.lt.s32.totalorder %s15_s7, %s15_s7 }
   0x9   :  { %p53_p3 = scmp.ne.s32.totalorder %s15_s7, %s52_s15  ;;  %p58_p5 = scmp.lt.s32.totalorder %s52_s15, %s52_s15 }
   0xb   :  { %p59_p6 = por %p58_p5, %p57_p4 }
   0xd   :  { %p60_p7 = pnand %p59_p6, %p53_p3 }
   0xf   :  { %63 = shalt.err (!%p60_p7)
}
  0x10   :  { %17 = dma.hbm_to_vmem [thread:$0]  %s126_s0, 64, %s15_s7, [#allocation3]  }
  0x11   :  { %86 = dma.done.wait [#allocation3], 64  }
  0x12   :  { %87 = vsyncadd [#allocation3], 4294967232  ;;  %v21_v0 = vld [vmem:[#allocation2] sm:$0xf]  ;;  %s91_s18 = smov [#allocation5]  }
  0x13   :  { %s31_s19 = sshll.u32 %s91_s18, 4  ;;  %v22_v1 = vmul.f32 4.0, %v21_v0  ;;  %s32_s19 = int_to_ptr.vmem [resolvable:$true] %s31_s19 }
  0x14   :  { %s64_s20 = scalar_lea.vmem %s32_s19, 64  ;;  %p69_p9 = scmp.lt.s32.totalorder %s32_s19, %s32_s19 }
  0x15   :  { %v23_v2 = vmul.f32 0.0, %v22_v1  ;;  %p65_p8 = scmp.ne.s32.totalorder %s32_s19, %s64_s20  ;;  %p70_p10 = scmp.lt.s32.totalorder %s64_s20, %s64_s20 }
  0x17   :  { %24 = vst [vmem:[#allocation5] sm:$0xf] %v23_v2  ;;  %p71_p11 = por %p70_p10, %p69_p9 }
  0x19   :  { %p72_p12 = pnand %p71_p11, %p65_p8 }
  0x1b   :  { %75 = shalt.err (!%p72_p12)
}
  0x1c   :  { %s76_s0 = scalar_lea.hbm %s127_s1, 64 }
  0x1d   :  { %p77_p13 = scmp.ne.s32.totalorder %s127_s1, %s76_s0  ;;  %p80_p0 = scmp.lt.u32.totalorder %s76_s0, %s127_s1 }
  0x1f   :  { %p82_p1 = pnand %p80_p0, %p77_p13 }
  0x21   :  { %85 = shalt.err (!%p82_p1)
}
  0x22   :  { %34 = dma.vmem_to_hbm [thread:$0]  %s32_s19, 64, %s127_s1, [#allocation4]  }
  0x23   :  { %88 = dma.done.wait [#allocation4], 64  }
  0x24   :  { %89 = vsyncadd [#allocation4], 4294967232 }
  0x25   :  { %38 = vsyncpa [#allocation3], 1 }
  0x26   :  { %39 = vsyncpa [#allocation4], 1 }

</bundles_post_ra>
